<compile_context>
chip_gen: v7x
topology: tpu7x:2x2x1
jax: 0.10.0
libtpu: 0.0.40
codegen_flags: <defaults>
</compile_context>

<pallas_src>
import numpy as np
import jax
import jax.numpy as jnp
from jax.experimental import pallas as pl
from jax.experimental.pallas import tpu as pltpu

EPS = 1e-5          # nn.LayerNorm default eps
MP = 8              # sublane-aligned pad for per-span masked-token count
SPAN_BATCH = 8      # spans processed per pair-head grid step
LANE = 128


# ----------------------------- Pallas kernels -----------------------------

def _ln(x, g, b):
    """Row-wise LayerNorm in f32 (stats stay f32 even when the matmul is bf16)."""
    mean = jnp.mean(x, axis=-1, keepdims=True)
    var = jnp.mean(jnp.square(x - mean), axis=-1, keepdims=True)
    return (x - mean) * jax.lax.rsqrt(var + EPS) * g + b


def fused_heads_kernel(x_ref, g_ref, b_ref, wm_ref, wb_ref,
                       mlm_ref, bpe_ref, y_ref):
    """Fused LayerNorm + mlm_out + bpe_head on one (tm, H) row tile.

    Grid is (row tiles, bpe column tiles); the LayerNorm result is cached in
    the bf16 scratch y_ref and the (lane-padded) mlm head is computed only on
    the first column step of each row tile.
    """
    @pl.when(pl.program_id(1) == 0)
    def _():
        y_ref[...] = _ln(x_ref[...], g_ref[...], b_ref[...]).astype(y_ref.dtype)
        mlm_ref[...] = jnp.dot(y_ref[...], wm_ref[...],
                               preferred_element_type=jnp.float32)
    bpe_ref[...] = jnp.dot(y_ref[...], wb_ref[...],
                           preferred_element_type=jnp.float32)


def fused_heads(x2d, gamma, beta, w_mlm_pad, w_bpe, *, tm=512, tn=1024):
    """One pass over x: LayerNorm(x) @ [w_mlm_pad] and LayerNorm(x) @ w_bpe."""
    n, h = x2d.shape
    r_pad = w_mlm_pad.shape[1]
    o = w_bpe.shape[1]
    tm = min(tm, n)
    tn = min(tn, o)
    return pl.pallas_call(
        fused_heads_kernel,
        out_shape=(jax.ShapeDtypeStruct((n, r_pad), jnp.float32),
                   jax.ShapeDtypeStruct((n, o), jnp.float32)),
        grid=(pl.cdiv(n, tm), pl.cdiv(o, tn)),
        in_specs=[pl.BlockSpec((tm, h), lambda i, j: (i, 0)),
                  pl.BlockSpec((1, h), lambda i, j: (0, 0)),
                  pl.BlockSpec((1, h), lambda i, j: (0, 0)),
                  pl.BlockSpec((h, r_pad), lambda i, j: (0, 0)),
                  pl.BlockSpec((h, tn), lambda i, j: (0, j))],
        out_specs=(pl.BlockSpec((tm, r_pad), lambda i, j: (i, 0)),
                   pl.BlockSpec((tm, tn), lambda i, j: (i, j))),
        scratch_shapes=[pltpu.VMEM((tm, h), jnp.bfloat16)],
        compiler_params=pltpu.CompilerParams(
            # mlm output (and the LN scratch) are resident across the column
            # axis -> it must be "arbitrary"; row tiles are independent.
            dimension_semantics=("parallel", "arbitrary"),
            vmem_limit_bytes=48 * 1024 * 1024),
    )(x2d, gamma.reshape(1, h), beta.reshape(1, h), w_mlm_pad, w_bpe)


def ln_qk_kernel(x_ref, g_ref, b_ref, wqk_ref, q_ref, k_ref):
    """Fused LayerNorm + the two pair-head projections via one concatenated
    (H, 2H) weight: a single MXU LHS push / weight stream, split on store."""
    h = q_ref.shape[-1]
    y = _ln(x_ref[...], g_ref[...], b_ref[...]).astype(wqk_ref.dtype)
    qk = jnp.dot(y, wqk_ref[...], preferred_element_type=jnp.float32)
    q_ref[...] = qk[:, :h]
    k_ref[...] = qk[:, h:]


def ln_qk(x2d, gamma, beta, w_qk, *, tm=256):
    """All masked rows of all spans projected in one batched call."""
    n, h = x2d.shape
    tm = min(tm, n)
    return pl.pallas_call(
        ln_qk_kernel,
        out_shape=(jax.ShapeDtypeStruct((n, h), jnp.float32),
                   jax.ShapeDtypeStruct((n, h), jnp.float32)),
        grid=(pl.cdiv(n, tm),),
        in_specs=[pl.BlockSpec((tm, h), lambda i: (i, 0)),
                  pl.BlockSpec((1, h), lambda i: (0, 0)),
                  pl.BlockSpec((1, h), lambda i: (0, 0)),
                  pl.BlockSpec((h, 2 * h), lambda i: (0, 0))],
        out_specs=(pl.BlockSpec((tm, h), lambda i: (i, 0)),
                   pl.BlockSpec((tm, h), lambda i: (i, 0))),
        compiler_params=pltpu.CompilerParams(
            dimension_semantics=("parallel",),
            vmem_limit_bytes=32 * 1024 * 1024),
    )(x2d, gamma.reshape(1, h), beta.reshape(1, h), w_qk)


def pair_kernel(q_ref, k_ref, g_ref, b_ref, wemb_ref, o_ref, p_ref):
    """SPAN_BATCH spans per grid step: per-span pairwise outer products
    (einsum 'ih,jh->ijh' flattened to (MP*MP, H)) + mlm_layer_norm are staged
    into the bf16 scratch p_ref, then one big matmul against embed_out."""
    h = q_ref.shape[-1]
    for s in range(SPAN_BATCH):                          # static unroll, static slices
        q = q_ref[pl.ds(s * MP, MP), :]                  # (MP, H) f32
        k = k_ref[pl.ds(s * MP, MP), :]
        pairs = (q[:, None, :] * k[None, :, :]).reshape(MP * MP, h)  # row i*MP+j = q_i*k_j
        p_ref[pl.ds(s * MP * MP, MP * MP), :] = _ln(
            pairs, g_ref[...], b_ref[...]).astype(p_ref.dtype)
    o_ref[...] = jnp.dot(p_ref[...], wemb_ref[...],
                         preferred_element_type=jnp.float32)


def pair_logits(q2, k2, gamma, beta, w_emb):
    """Batched pair head: q2/k2 are (num_spans_padded*MP, H) with the span
    count padded to a multiple of SPAN_BATCH; output (num_spans_padded*MP*MP,
    R*R).  mlm_layer_norm params and embed_out stay resident in VMEM."""
    n, h = q2.shape
    spans = n // MP
    assert spans % SPAN_BATCH == 0
    steps = spans // SPAN_BATCH
    rr = w_emb.shape[1]
    rows_in = SPAN_BATCH * MP
    rows_out = SPAN_BATCH * MP * MP
    return pl.pallas_call(
        pair_kernel,
        out_shape=jax.ShapeDtypeStruct((spans * MP * MP, rr), jnp.float32),
        grid=(steps,),
        in_specs=[pl.BlockSpec((rows_in, h), lambda i: (i, 0)),
                  pl.BlockSpec((rows_in, h), lambda i: (i, 0)),
                  pl.BlockSpec((1, h), lambda i: (0, 0)),
                  pl.BlockSpec((1, h), lambda i: (0, 0)),
                  pl.BlockSpec((h, rr), lambda i: (0, 0))],
        out_specs=pl.BlockSpec((rows_out, rr), lambda i: (i, 0)),
        scratch_shapes=[pltpu.VMEM((rows_out, h), jnp.bfloat16)],
        compiler_params=pltpu.CompilerParams(
            dimension_semantics=("parallel",),
            vmem_limit_bytes=32 * 1024 * 1024),
    )(q2, k2, gamma.reshape(1, h), beta.reshape(1, h), w_emb)


# ------------------------------ PFM forward -------------------------------

def pfm_forward(params, x_lbh, residue_seq, mask_aa):
    L, B, H = x_lbh.shape
    R = params['num_residues']
    r_pad = ((R + LANE - 1) // LANE) * LANE

    # MXU inputs in bf16; LN stats / accumulation / outputs stay f32.
    w_mlm_pad = jnp.pad(params['w_mlm'], ((0, 0), (0, r_pad - R))).astype(jnp.bfloat16)
    w_bpe = params['w_bpe'].astype(jnp.bfloat16)
    w_qk = jnp.concatenate([params['w_q'], params['w_k']], axis=1).astype(jnp.bfloat16)
    w_emb = params['w_embed_out'].astype(jnp.bfloat16)

    # NOTE: transposing x (B*L*H*4 bytes) is far cheaper than emitting/
    # transposing the 16384-wide bpe logits in (L, B, ...) order.
    x = jnp.transpose(x_lbh, (1, 0, 2))                  # x.transpose(0, 1) -> (B, L, H)
    x2d = x.reshape(B * L, H)                            # raw rows; LN fused into kernels

    # One pass over x for both dense heads.
    mlm_pad, bpe_flat = fused_heads(x2d, params['ln_g'], params['ln_b'],
                                    w_mlm_pad, w_bpe)
    mlm_logits = mlm_pad[:, :R].reshape(B, L, R)
    bpe_logits = bpe_flat.reshape(B, L, -1)

    # Data-dependent span parsing (mirrors the PyTorch python loop).  The loop
    # only builds small host-side int32 index tables -- no device calls.
    seq_np = np.asarray(residue_seq)
    mask_np = np.asarray(mask_aa)
    pair_mask_aa = np.zeros((B, L, L, 1), dtype=np.int8)
    row_idx_list, pair_idx_list, mask_list, diag_seq_list = [], [], [], []
    span = 0
    for i in range(B):
        starts = np.nonzero(seq_np[i] == 0)[0]
        ends = np.nonzero(seq_np[i] == 2)[0]
        for j in range(len(ends)):
            s_idx = int(starts[j])
            e_idx = int(ends[j])
            commas = np.nonzero(seq_np[i, s_idx:e_idx] == 29)[0]
            if len(commas) == 1:
                hi = s_idx + int(commas[0])
            elif len(commas) == 0:
                hi = e_idx
            else:
                raise ValueError(
                    f'comma index error, number of comma is {len(commas)}')
            pair_mask_aa[i, s_idx:hi, s_idx:hi, :] = 1
            rel = np.nonzero(mask_np[i, s_idx:hi, 0].astype(bool))[0]
            m = len(rel)
            assert 0 < m <= MP
            pos = s_idx + rel
            rows = np.zeros(MP, dtype=np.int32)          # pad slots point at row 0
            rows[:m] = (i * L + pos).astype(np.int32)
            row_idx_list.append(rows)
            ii, jj = np.meshgrid(np.arange(m), np.arange(m), indexing='ij')
            pair_idx_list.append(
                (span * MP * MP + ii.reshape(-1) * MP + jj.reshape(-1)).astype(np.int32))
            mask_list.append(np.eye(m, dtype=bool).reshape(-1))
            diag_seq_list.append(seq_np[i, pos])
            span += 1

    # Pad the span count to a multiple of SPAN_BATCH (pad spans alias row 0
    # and are never selected by pair_idx).
    pad_spans = (-span) % SPAN_BATCH
    if pad_spans:
        row_idx_list.append(np.zeros((pad_spans * MP,), dtype=np.int32))

    row_idx = jnp.asarray(np.concatenate(row_idx_list))          # (spans_padded*MP,)
    pair_idx = jnp.asarray(np.concatenate(pair_idx_list))        # (sum m_i^2,)

    # One gather of all masked rows (raw x; LN is fused in ln_qk).
    masked_x2 = jnp.take(x2d, row_idx, axis=0)                   # (spans_padded*MP, H)

    # Hoisted, batched q/k projections (one LN + one concatenated matmul).
    q2, k2 = ln_qk(masked_x2, params['ln_g'], params['ln_b'], w_qk)

    # Span-batched pair-head kernel.
    out_flat = pair_logits(q2, k2, params['mlm_ln_g'], params['mlm_ln_b'], w_emb)

    # Select the valid (i<m, j<m) pairs of every span with one gather.
    x_out = jnp.take(out_flat, pair_idx, axis=0)                 # (sum m_i^2, R*R)

    diag_mask = jnp.asarray(np.concatenate(mask_list, axis=0))
    diag_seq = jnp.asarray(np.concatenate(diag_seq_list, axis=0))
    return (x_out, mlm_logits, bpe_logits, jnp.asarray(mask_np),
            jnp.asarray(pair_mask_aa), diag_mask, diag_seq)


# --------------------------------- main ------------------------------------

if __name__ == "__main__":
    B, L, H = 2, 16, 32          # batch, seq, encoder_embed_dim
    R = 16                       # args.num_residues
    BPE = 16384                  # bpe_head output dim (hardcoded in module)

    key = jax.random.PRNGKey(0)
    ks = jax.random.split(key, 10)
    params = dict(
        num_residues=R,
        ln_g=1.0 + 0.1 * jax.random.normal(ks[0], (H,), jnp.float32),
        ln_b=0.1 * jax.random.normal(ks[1], (H,), jnp.float32),
        w_q=jax.random.normal(ks[2], (H, H), jnp.float32) / np.sqrt(H),
        w_k=jax.random.normal(ks[3], (H, H), jnp.float32) / np.sqrt(H),
        w_bpe=jax.random.normal(ks[4], (H, BPE), jnp.float32) / np.sqrt(H),
        mlm_ln_g=1.0 + 0.1 * jax.random.normal(ks[5], (H,), jnp.float32),
        mlm_ln_b=0.1 * jax.random.normal(ks[6], (H,), jnp.float32),
        w_embed_out=jax.random.normal(ks[7], (H, R * R), jnp.float32) / np.sqrt(H),
        w_mlm=jax.random.normal(ks[8], (H, R), jnp.float32) / np.sqrt(H),
    )

    # Synthetic encoder output (L, B, H) — stands in for PFMEncoder output.
    x_lbh = jax.random.normal(ks[9], (L, B, H), jnp.float32)

    # batched_data['x'] : 0 = span start, 2 = span end, 29 = comma, 3 = pad.
    residue_seq = np.array(
        [[0, 5, 6, 7, 29, 8, 9, 2, 0, 10, 11, 2, 3, 3, 3, 3],
         [0, 12, 13, 14, 15, 2, 3, 3, 3, 3, 3, 3, 3, 3, 3, 3]],
        dtype=np.int32)
    mask_aa = np.zeros((B, L, 1), dtype=np.int8)
    mask_aa[0, [1, 2, 3, 9, 10], 0] = 1
    mask_aa[1, [2, 3, 4], 0] = 1

    outs = pfm_forward(params, x_lbh, residue_seq, mask_aa)
    outs = jax.block_until_ready(outs)

    x_pair, mlm_logits, bpe_logits, mask_aa_o, pair_mask_aa, diag_mask, diag_seq = outs
    assert x_pair.shape == (3 * 3 + 2 * 2 + 3 * 3, R * R)
    assert mlm_logits.shape == (B, L, R)
    assert bpe_logits.shape == (B, L, BPE)
    assert pair_mask_aa.shape == (B, L, L, 1)
    assert diag_mask.shape[0] == x_pair.shape[0]
    assert diag_seq.shape[0] == 3 + 2 + 3
    assert bool(jnp.all(jnp.isfinite(x_pair)))
    assert bool(jnp.all(jnp.isfinite(mlm_logits)))
    assert bool(jnp.all(jnp.isfinite(bpe_logits)))
    print("KERNEL_OK")
</pallas_src>

<mosaic_0001>
module attributes {stable_mosaic.version = 11 : i64} {
  func.func @fused_heads_kernel(%arg0: i32, %arg1: i32, %arg2: memref<32x32xf32, #tpu.memory_space<vmem>>, %arg3: memref<1x32xf32, #tpu.memory_space<vmem>>, %arg4: memref<1x32xf32, #tpu.memory_space<vmem>>, %arg5: memref<32x128xbf16, #tpu.memory_space<vmem>>, %arg6: memref<32x1024xbf16, #tpu.memory_space<vmem>>, %arg7: memref<32x128xf32, #tpu.memory_space<vmem>>, %arg8: memref<32x1024xf32, #tpu.memory_space<vmem>>, %arg9: memref<32x32xbf16, #tpu.memory_space<vmem>>) attributes {dimension_semantics = [#tpu.dimension_semantics<parallel>, #tpu.dimension_semantics<arbitrary>], iteration_bounds = array<i64: 1, 16>, scalar_prefetch = 0 : i64, scratch_operands = 1 : i64, tpu.core_type = #tpu.core_type<tc>, window_params = [{transform_indices = @transform_0, window_bounds = array<i64: 32, 32>}, {pipeline_mode = #tpu.pipeline_mode<synchronous>, transform_indices = @transform_1, window_bounds = array<i64: 1, 32>}, {pipeline_mode = #tpu.pipeline_mode<synchronous>, transform_indices = @transform_2, window_bounds = array<i64: 1, 32>}, {pipeline_mode = #tpu.pipeline_mode<synchronous>, transform_indices = @transform_3, window_bounds = array<i64: 32, 128>}, {transform_indices = @transform_4, window_bounds = array<i64: 32, 1024>}, {transform_indices = @transform_5, window_bounds = array<i64: 32, 128>}, {transform_indices = @transform_6, window_bounds = array<i64: 32, 1024>}]} {
    %c0_i32 = arith.constant 0 : i32
    %0 = arith.cmpi eq, %arg1, %c0_i32 : i32
    %1 = arith.extui %0 : i1 to i32
    %c0_i32_0 = arith.constant 0 : i32
    %2 = arith.cmpi ne, %1, %c0_i32_0 : i32
    scf.if %2 {
      %c0_6 = arith.constant 0 : index
      %c0_7 = arith.constant 0 : index
      %7 = vector.load %arg2[%c0_6, %c0_7] : memref<32x32xf32, #tpu.memory_space<vmem>>, vector<32x32xf32>
      %c0_8 = arith.constant 0 : index
      %c0_9 = arith.constant 0 : index
      %8 = vector.load %arg3[%c0_8, %c0_9] : memref<1x32xf32, #tpu.memory_space<vmem>>, vector<1x32xf32>
      %c0_10 = arith.constant 0 : index
      %c0_11 = arith.constant 0 : index
      %9 = vector.load %arg4[%c0_10, %c0_11] : memref<1x32xf32, #tpu.memory_space<vmem>>, vector<1x32xf32>
      %cst_12 = arith.constant dense<0.000000e+00> : vector<32xf32>
      %10 = vector.multi_reduction <add>, %7, %cst_12 [1] : vector<32x32xf32> to vector<32xf32>
      %11 = vector.shape_cast %10 : vector<32xf32> to vector<32x1xf32>
      %cst_13 = arith.constant 3.200000e+01 : f32
      %12 = vector.broadcast %cst_13 : f32 to vector<32x1xf32>
      %13 = arith.divf %11, %12 : vector<32x1xf32>
      %14 = vector.broadcast %13 : vector<32x1xf32> to vector<32x32xf32>
      %15 = arith.subf %7, %14 : vector<32x32xf32>
      %16 = arith.mulf %15, %15 : vector<32x32xf32>
      %cst_14 = arith.constant dense<0.000000e+00> : vector<32xf32>
      %17 = vector.multi_reduction <add>, %16, %cst_14 [1] : vector<32x32xf32> to vector<32xf32>
      %18 = vector.shape_cast %17 : vector<32xf32> to vector<32x1xf32>
      %cst_15 = arith.constant 3.200000e+01 : f32
      %19 = vector.broadcast %cst_15 : f32 to vector<32x1xf32>
      %20 = arith.divf %18, %19 : vector<32x1xf32>
      %21 = vector.broadcast %13 : vector<32x1xf32> to vector<32x32xf32>
      %22 = arith.subf %7, %21 : vector<32x32xf32>
      %cst_16 = arith.constant 9.99999974E-6 : f32
      %23 = vector.broadcast %cst_16 : f32 to vector<32x1xf32>
      %24 = arith.addf %20, %23 : vector<32x1xf32>
      %25 = math.rsqrt %24 : vector<32x1xf32>
      %26 = vector.broadcast %25 : vector<32x1xf32> to vector<32x32xf32>
      %27 = arith.mulf %22, %26 : vector<32x32xf32>
      %28 = vector.broadcast %8 : vector<1x32xf32> to vector<32x32xf32>
      %29 = arith.mulf %27, %28 : vector<32x32xf32>
      %30 = vector.broadcast %9 : vector<1x32xf32> to vector<32x32xf32>
      %31 = arith.addf %29, %30 : vector<32x32xf32>
      %32 = arith.truncf %31 : vector<32x32xf32> to vector<32x32xbf16>
      %c0_17 = arith.constant 0 : index
      %c0_18 = arith.constant 0 : index
      %33 = vector.load %arg9[%c0_17, %c0_18] : memref<32x32xbf16, #tpu.memory_space<vmem>>, vector<32x32xbf16>
      tpu.vector_store %arg9[%c0_17, %c0_18], %32 {strides = array<i32>} : memref<32x32xbf16, #tpu.memory_space<vmem>>, vector<32x32xbf16>,
      %c0_19 = arith.constant 0 : index
      %c0_20 = arith.constant 0 : index
      %34 = vector.load %arg9[%c0_19, %c0_20] : memref<32x32xbf16, #tpu.memory_space<vmem>>, vector<32x32xbf16>
      %c0_21 = arith.constant 0 : index
      %c0_22 = arith.constant 0 : index
      %35 = vector.load %arg5[%c0_21, %c0_22] : memref<32x128xbf16, #tpu.memory_space<vmem>>, vector<32x128xbf16>
      %cst_23 = arith.constant dense<0.000000e+00> : vector<32x128xf32>
      %36 = tpu.matmul %34, %35, %cst_23 {dimension_numbers = #tpu.dot_dimension_numbers<[1], [0], [0], [1], [0, 0, 1, 1], [], []>} : vector<32x32xbf16>, vector<32x128xbf16>, vector<32x128xf32> -> vector<32x128xf32>
      %c0_24 = arith.constant 0 : index
      %c0_25 = arith.constant 0 : index
      %37 = vector.load %arg7[%c0_24, %c0_25] : memref<32x128xf32, #tpu.memory_space<vmem>>, vector<32x128xf32>
      tpu.vector_store %arg7[%c0_24, %c0_25], %36 {strides = array<i32>} : memref<32x128xf32, #tpu.memory_space<vmem>>, vector<32x128xf32>,
    } else {
    }
    %c0 = arith.constant 0 : index
    %c0_1 = arith.constant 0 : index
    %3 = vector.load %arg9[%c0, %c0_1] : memref<32x32xbf16, #tpu.memory_space<vmem>>, vector<32x32xbf16>
    %c0_2 = arith.constant 0 : index
    %c0_3 = arith.constant 0 : index
    %4 = vector.load %arg6[%c0_2, %c0_3] : memref<32x1024xbf16, #tpu.memory_space<vmem>>, vector<32x1024xbf16>
    %cst = arith.constant dense<0.000000e+00> : vector<32x1024xf32>
    %5 = tpu.matmul %3, %4, %cst {dimension_numbers = #tpu.dot_dimension_numbers<[1], [0], [0], [1], [0, 0, 1, 1], [], []>} : vector<32x32xbf16>, vector<32x1024xbf16>, vector<32x1024xf32> -> vector<32x1024xf32>
    %c0_4 = arith.constant 0 : index
    %c0_5 = arith.constant 0 : index
    %6 = vector.load %arg8[%c0_4, %c0_5] : memref<32x1024xf32, #tpu.memory_space<vmem>>, vector<32x1024xf32>
    tpu.vector_store %arg8[%c0_4, %c0_5], %5 {strides = array<i32>} : memref<32x1024xf32, #tpu.memory_space<vmem>>, vector<32x1024xf32>,
    return
  }
  func.func @transform_0(%arg0: i32, %arg1: i32) -> (i32, i32) {
    %c0_i32 = arith.constant 0 : i32
    %c0_i32_0 = arith.constant 0 : i32
    return %arg0, %c0_i32 : i32, i32
  }
  func.func @transform_1(%arg0: i32, %arg1: i32) -> (i32, i32) {
    %c0_i32 = arith.constant 0 : i32
    %c0_i32_0 = arith.constant 0 : i32
    %c0_i32_1 = arith.constant 0 : i32
    return %c0_i32, %c0_i32_0 : i32, i32
  }
  func.func @transform_2(%arg0: i32, %arg1: i32) -> (i32, i32) {
    %c0_i32 = arith.constant 0 : i32
    %c0_i32_0 = arith.constant 0 : i32
    %c0_i32_1 = arith.constant 0 : i32
    return %c0_i32, %c0_i32_0 : i32, i32
  }
  func.func @transform_3(%arg0: i32, %arg1: i32) -> (i32, i32) {
    %c0_i32 = arith.constant 0 : i32
    %c0_i32_0 = arith.constant 0 : i32
    %c0_i32_1 = arith.constant 0 : i32
    return %c0_i32, %c0_i32_0 : i32, i32
  }
  func.func @transform_4(%arg0: i32, %arg1: i32) -> (i32, i32) {
    %c0_i32 = arith.constant 0 : i32
    %c0_i32_0 = arith.constant 0 : i32
    return %c0_i32, %arg1 : i32, i32
  }
  func.func @transform_5(%arg0: i32, %arg1: i32) -> (i32, i32) {
    %c0_i32 = arith.constant 0 : i32
    %c0_i32_0 = arith.constant 0 : i32
    return %arg0, %c0_i32 : i32, i32
  }
  func.func @transform_6(%arg0: i32, %arg1: i32) -> (i32, i32) {
    %c0_i32 = arith.constant 0 : i32
    return %arg0, %arg1 : i32, i32
  }
}

</mosaic_0001>

<bundles_post_ra>
// kernel: tpu_custom_call.1
= control target key start
LH: loop header
LB: loop body
LE: loop exit
PB: predicated region body
PF: predicated region fallthrough
CT: control target
= control target key end

     0   :  { %12 = vsyncpa [#allocation4], 0  ;;  %s1962_s0 = inlined_call_operand.hbm [shape: f32[32,32], index: 0, kind: input, shape index: {}]   ;;  %s1963_s1 = inlined_call_operand.hbm [shape: f32[1,32], index: 1, kind: input, shape index: {}]   ;;  %s1964_s2 = inlined_call_operand.hbm [shape: f32[1,32], index: 2, kind: input, shape index: {}]   ;;  %s1965_s3 = inlined_call_operand.hbm [shape: bf16[32,128], index: 3, kind: input, shape index: {}]   ;;  %s1966_s4 = inlined_call_operand.hbm [shape: bf16[32,16384], index: 4, kind: input, shape index: {}]   ;;  %s1967_s5 = inlined_call_operand.hbm [shape: f32[32,128], index: 5, kind: output, shape index: {0}]   ;;  %s1968_s6 = inlined_call_operand.hbm [shape: f32[32,16384], index: 6, kind: output, shape index: {1}]  }
   0x1   :  { %13 = vsyncpa [#allocation7], 0 }
   0x2   :  { %14 = vsyncpa [#allocation10], 0 }
   0x3   :  { %15 = vsyncpa [#allocation5], 0 }
   0x4   :  { %16 = vsyncpa [#allocation14], 0 }
   0x5   :  { %18 = vsyncpa [#allocation14 + $0x1], 0  ;;  %s1566_s21 = smov 0   ;;  %s1568_s22 = smov 0  }
   0x6   :  { %s1570_s23 = smov 0   ;;  %s1572_s24 = smov 0  }
   0x7   :  { %s1574_s25 = smov 0   ;;  %s1576_s26 = smov 0  }
   0x8 LB: > { %1979 = sst [smem:[#allocation21_spill]] %s1489_s21  ;;  %s1597_s27 = sadd.s32 4294967295, %s1509_s26   ;;  %s1509_s26 = sphi %s1576_s26, %s24_s26   ;;  %s1505_s25 = sphi %s1574_s25, %s2013_s25   ;;  %s1501_s24 = sphi %s1572_s24, %s2012_s24   ;;  %s1497_s23 = sphi %s1570_s23, %s2011_s23   ;;  %s1493_s22 = sphi %s1568_s22, %s2010_s22   ;;  %s1489_s21 = sphi %s1566_s21, %s2009_s21  }
   0x9   : > { %s1041_s28 = sadd.s32 4294967294, %s1509_s26   ;;  %p139_p0 = scmp.ne.s32.totalorder %s1497_s23, %s1493_s22 }
   0xa   : > { %p140_p1 = scmp.eq.s32.totalorder %s1509_s26, 0  ;;  %p145_p2 = scmp.ne.s32.totalorder %s1493_s22, %s1489_s21 }
   0xb   : > { %p1970_p3 = scmp.eq.s32.totalorder %s1597_s27, 0  ;;  %p1969_p5 = scmp.eq.s32.totalorder %s1597_s27, 15 }
   0xc   : > { %p1606_p4 = por %p140_p1, %p139_p0  ;;  %p203_p7 = scmp.eq.s32.totalorder %s1041_s28, 15 }
   0xd   : > { %p1613_p6 = por %p1970_p3, %p145_p2  ;;  %p1619_p8 = por %p1969_p5, %p139_p0 }
   0xe   : > { %p1042_p9 = scmp.ge.s32.totalorder %s1509_s26, 1  ;;  %p1624_p10 = por %p203_p7, %p145_p2 }
   0xf   : > { %s1981_s30 = scalar_select %p1613_p6, 1, 0 }
  0x10   : > { %s1982_s7 = scalar_select %p1619_p8, 1, 0 }
  0x11   : > { %s1984_s8 = scalar_select %p1624_p10, 1, 0 }
  0x12   : > { %1983 = sst [smem:[#allocation22_spill]] %s1982_s7  ;;  %p210_p11 = scmp.lt.s32.totalorder %s1509_s26, 17 }
  0x13   : > { %1985 = sst [smem:[#allocation23_spill]] %s1984_s8  ;;  %s1511_s10 = smov [#allocation3]  }
  0x14   : > { %p1629_p12 = pnand %p1042_p9, %p210_p11  ;;  %s225_s11 = sshll.u32 %s1511_s10, 4  ;;  %s1633_s11 = int_to_ptr.vmem [resolvable:$true] %s225_s11 }
  0x15   : > { %p1159_p0 = scmp.lt.s32.totalorder %s1509_s26, 16  ;;  %s1512_s14 = smov [#allocation6]  }
  0x16   : > { %s1986_s9 = scalar_select %p1629_p12, 1, 0 }
  0x17   : > { %p1134_p13 = pneg %p1629_p12  ;;  %p1646_p2 = pnand %p1159_p0, %p1606_p4 }
  0x18   : > { %s239_s15 = sshll.u32 %s1512_s14, 4  ;;  %s1243_s18 = scalar_lea.hbm %s1962_s0, 512  ;;  %s1650_s15 = int_to_ptr.vmem [resolvable:$true] %s239_s15 }
  0x19   : > { %p1640_p1 = pnand %p1134_p13, %p1970_p3  ;;  %p1244_p7 = scmp.ne.s32.totalorder %s1962_s0, %s1243_s18 }
  0x1a   : > { %s1988_s13 = scalar_select %p1646_p2, 1, 0 }
  0x1b   : > { %p1660_p9 = pneg %p1640_p1  ;;  %p1250_p13 = scmp.lt.u32.totalorder %s1243_s18, %s1962_s0 }
  0x1d   : > { %p1246_p4 = pnand %p1660_p9, %p1244_p7 }
  0x1f   : > { %p1247_p11 = pneg %p1246_p4 }
  0x21   : > { %p1252_p0 = pnand %p1250_p13, %p1247_p11 }
  0x23   : > { %1255 = shalt.err (!%p1252_p0)
}
  0x24   : > { %s1256_s14 = scalar_lea.vmem %s1633_s11, 512  ;;  %p1264_p8 = scmp.lt.s32.totalorder %s1633_s11, %s1633_s11 }
  0x25   : > { %p1257_p5 = scmp.ne.s32.totalorder %s1633_s11, %s1256_s14  ;;  %p1265_p6 = scmp.lt.s32.totalorder %s1256_s14, %s1256_s14 }
  0x27   : > { %p1259_p3 = pnand %p1257_p5, %p1660_p9  ;;  %p1266_p7 = por %p1265_p6, %p1264_p8 }
  0x29   : > { %p1260_p10 = pneg %p1259_p3 }
  0x2b   : > { %p1267_p4 = pnand %p1266_p7, %p1260_p10 }
  0x2d   : > { %1270 = shalt.err (!%p1267_p4)
}
  0x2e   : > { %s1513_s16 = smov 128   ;;  %s1514_s17 = smov 8  }
  0x2f   : > { %1137 = dma.hbm_to_vmem [thread:$0]  (!%p1640_p1), %s1962_s0, 512, %s1633_s11, [#allocation4], %s1513_s16, %s1513_s16, %s1514_s17  }
  0x30   : > { %s1271_s10 = scalar_lea.hbm %s1963_s1, 16 }
  0x31   : > { %p1272_p3 = scmp.ne.s32.totalorder %s1963_s1, %s1271_s10  ;;  %p1278_p8 = scmp.lt.u32.totalorder %s1271_s10, %s1963_s1 }
  0x33   : > { %p1274_p5 = pnand %p1272_p3, %p1660_p9 }
  0x35   : > { %p1275_p6 = pneg %p1274_p5 }
  0x37   : > { %p1280_p10 = pnand %p1278_p8, %p1275_p6 }
  0x39   : > { %1283 = shalt.err (!%p1280_p10)
}
  0x3a   : > { %s1284_s11 = scalar_lea.vmem %s1650_s15, 16  ;;  %s1291_s21 = scalar_lea.vmem %s1650_s15, 32 }
  0x3b   : > { %p1285_p11 = scmp.ne.s32.totalorder %s1650_s15, %s1284_s11  ;;  %p1292_p7 = scmp.lt.s32.totalorder %s1650_s15, %s1650_s15 }
  0x3c   : > { %p1293_p4 = scmp.lt.s32.totalorder %s1291_s21, %s1284_s11 }
  0x3d   : > { %p1287_p13 = pnand %p1285_p11, %p1660_p9 }
  0x3e   : > { %p1294_p3 = por %p1293_p4, %p1292_p7 }
  0x3f   : > { %p1288_p0 = pneg %p1287_p13 }
  0x41   : > { %p1295_p5 = pnand %p1294_p3, %p1288_p0 }
  0x43   : > { %1298 = shalt.err (!%p1295_p5)
}
  0x44   : > { %1140 = dma.hbm_to_vmem [thread:$0]  (!%p1640_p1), %s1963_s1, 16, %s1650_s15, [#allocation7]  }
  0x45   : > { %s1515_s16 = smov [#allocation8]   ;;  %s1516_s18 = smov [#allocation9]  }
  0x46   : > { %s250_s17 = sshll.u32 %s1515_s16, 4  ;;  %s260_s19 = sshll.u32 %s1516_s18, 4  ;;  %s251_s17 = int_to_ptr.vmem [resolvable:$true] %s250_s17  ;;  %s261_s19 = int_to_ptr.vmem [resolvable:$true] %s260_s19 }
  0x47   : > { %s1299_s10 = scalar_lea.hbm %s1964_s2, 16 }
  0x48   : > { %p1300_p6 = scmp.ne.s32.totalorder %s1964_s2, %s1299_s10  ;;  %p1306_p11 = scmp.lt.u32.totalorder %s1299_s10, %s1964_s2 }
  0x4a   : > { %p1302_p8 = pnand %p1300_p6, %p1660_p9 }
  0x4c   : > { %p1303_p10 = pneg %p1302_p8 }
  0x4e   : > { %p1308_p13 = pnand %p1306_p11, %p1303_p10 }
  0x50   : > { %1311 = shalt.err (!%p1308_p13)
}
  0x51   : > { %s1312_s15 = scalar_lea.vmem %s251_s17, 16  ;;  %s1319_s8 = scalar_lea.vmem %s251_s17, 32 }
  0x52   : > { %p1313_p0 = scmp.ne.s32.totalorder %s251_s17, %s1312_s15  ;;  %p1320_p3 = scmp.lt.s32.totalorder %s251_s17, %s251_s17 }
  0x53   : > { %p1321_p5 = scmp.lt.s32.totalorder %s1319_s8, %s1312_s15 }
  0x54   : > { %p1315_p7 = pnand %p1313_p0, %p1660_p9 }
  0x55   : > { %p1322_p12 = por %p1321_p5, %p1320_p3 }
  0x56   : > { %p1316_p4 = pneg %p1315_p7 }
  0x58   : > { %p1323_p2 = pnand %p1322_p12, %p1316_p4 }
  0x5a   : > { %1326 = shalt.err (!%p1323_p2)
}
  0x5b   : > { %1143 = dma.hbm_to_vmem [thread:$0]  (!%p1640_p1), %s1964_s2, 16, %s251_s17, [#allocation7]  }
  0x5c   : > { %s1327_s10 = scalar_lea.hbm %s1965_s3, 256 }
  0x5d   : > { %p1328_p6 = scmp.ne.s32.totalorder %s1965_s3, %s1327_s10  ;;  %p1334_p2 = scmp.lt.u32.totalorder %s1327_s10, %s1965_s3 }
  0x5f   : > { %p1330_p8 = pnand %p1328_p6, %p1660_p9 }
  0x61   : > { %p1331_p12 = pneg %p1330_p8 }
  0x63   : > { %p1336_p10 = pnand %p1334_p2, %p1331_p12 }
  0x65   : > { %1339 = shalt.err (!%p1336_p10)
}
  0x66   : > { %s1340_s15 = scalar_lea.vmem %s261_s19, 256  ;;  %p1348_p7 = scmp.lt.s32.totalorder %s261_s19, %s261_s19 }
  0x67   : > { %p1341_p11 = scmp.ne.s32.totalorder %s261_s19, %s1340_s15  ;;  %p1349_p4 = scmp.lt.s32.totalorder %s1340_s15, %s1340_s15 }
  0x69   : > { %p1343_p13 = pnand %p1341_p11, %p1660_p9  ;;  %p1350_p3 = por %p1349_p4, %p1348_p7 }
  0x6b   : > { %p1344_p0 = pneg %p1343_p13 }
  0x6d   : > { %p1351_p5 = pnand %p1350_p3, %p1344_p0 }
  0x6f   : > { %1354 = shalt.err (!%p1351_p5)
}
  0x70   : > { %s1517_s17 = smov 64   ;;  %s1518_s8 = smov 4  }
  0x71   : > { %1146 = dma.hbm_to_vmem [thread:$0]  (!%p1640_p1), %s1965_s3, 256, %s261_s19, [#allocation10], %s1517_s17, %s1517_s17, %s1518_s8  }
  0x72   : > { %s132_s28 = sadd.s32 1, %s1497_s23  ;;  %s33_s20 = sadd.s32 1, %s1505_s25 }
  0x73   : > { %s274_s29 = sand.u32 1, %s1509_s26   ;;  %p34_p9 = scmp.ge.s32.totalorder %s33_s20, 16 }
  0x74   : > { %s276_s10 = sand.u32 1, %s1497_s23   ;;  %s1096_s14 = sshll.u32 %s1505_s25, 9 }
  0x75   : > { %s2015_s20 = smov (%p34_p9, %s33_s20), 0  ;;  %s1048_s11 = sshll.u32 %s276_s10, 7 }
  0x76   : > { %s1751_s12 = scalar_lea.hbm %s1966_s4, %s1096_s14  ;;  %s129_s19 = ssub.s32 %s1505_s25, %s2015_s20 }
  0x77   : > { %p130_p1 = scmp.eq.s32.totalorder %s129_s19, 0  ;;  %s278_s15 = scalar_lea.vmem [#allocation11], %s1048_s11 }
  0x78   : > { %s285_s17 = sshll.u32 %s278_s15, 4  ;;  %s1760_s16 = scalar_lea.sflag [#allocation4], %s274_s29  ;;  %s1755_s17 = int_to_ptr.vmem [resolvable:$true] %s285_s17 }
  0x79   : > { %s1758_s8 = scalar_select %p130_p1, %s1497_s23, %s132_s28  }
  0x7a   : > { %s1355_s18 = scalar_lea.hbm %s1751_s12, 2048  ;;  %p1990_p8 = scmp.ne.s32.totalorder %s1988_s13, 0 }
  0x7b   : > { %p1356_p6 = scmp.ne.s32.totalorder %s1751_s12, %s1355_s18  ;;  %s1360_s21 = scalar_lea.hbm %s1966_s4, 32768 }
  0x7c   : > { %p1357_p12 = pneg %p1990_p8  ;;  %p1361_p11 = scmp.lt.u32.totalorder %s1751_s12, %s1966_s4 }
  0x7d   : > { %p1362_p13 = scmp.lt.u32.totalorder %s1360_s21, %s1355_s18  ;;  %p1364_p7 = scmp.lt.u32.totalorder %s1355_s18, %s1751_s12 }
  0x7e   : > { %p1358_p2 = pnand %p1357_p12, %p1356_p6 }
  0x7f   : > { %p1363_p0 = por %p1362_p13, %p1361_p11 }
  0x80   : > { %p1359_p10 = pneg %p1358_p2 }
  0x81   : > { %p1365_p4 = por %p1364_p7, %p1363_p0 }
  0x83   : > { %p1366_p3 = pnand %p1365_p4, %p1359_p10 }
  0x85   : > { %1369 = shalt.err (!%p1366_p3)
}
  0x86   : > { %s1370_s28 = scalar_lea.vmem %s1755_s17, 2048  ;;  %s1519_s29 = smov [#allocation11]  }
  0x87   : > { %p1371_p5 = scmp.ne.s32.totalorder %s1755_s17, %s1370_s28  ;;  %s1375_s19 = sshll.u32 %s1519_s29, 4  ;;  %s1376_s19 = int_to_ptr.vmem [resolvable:$false] %s1375_s19 }
  0x88   : > { %s1377_s15 = scalar_lea.vmem %s1376_s19, 4096  ;;  %p1378_p6 = scmp.lt.s32.totalorder %s1755_s17, %s1376_s19 }
  0x89   : > { %p1373_p9 = pnand %p1371_p5, %p1357_p12  ;;  %p1379_p2 = scmp.lt.s32.totalorder %s1377_s15, %s1370_s28 }
  0x8b   : > { %p1374_p1 = pneg %p1373_p9  ;;  %p1380_p11 = por %p1379_p2, %p1378_p6 }
  0x8d   : > { %p1381_p13 = pnand %p1380_p11, %p1374_p1 }
  0x8f   : > { %1384 = shalt.err (!%p1381_p13)
}
  0x90   : > { %s1520_s18 = smov 8192   ;;  %s1521_s10 = smov 512  }
  0x91   : > { %s1522_s14 = smov 32   ;;  %p1991_p12 = scmp.ne.s32.totalorder %s1986_s9, 0 }
  0x92   : > { %1150 = dma.hbm_to_vmem [thread:$0]  (!%p1990_p8), %s1751_s12, 2048, %s1755_s17, %s1760_s16, %s1520_s18, %s1521_s10, %s1522_s14  }
  0x93   : > { %297 = sbr.rel (%p1991_p12) target bundleno = 986 (0x3da), region = 40  ;;  %p1992_p10 = scmp.eq.s32.totalorder (!%p1991_p12), %s1597_s27, 0 }
  0x9a   : > { %1464 = dma.done.wait (%p1992_p10), [#allocation4], 512   ;;  %p1993_p0 = pmov %p1992_p10 }
  0x9c   : > { %1466 = vsyncadd (%p1993_p0), [#allocation4], 4294966784  ;;  %p1994_p7 = pmov %p1993_p0 }
  0x9d   : > { %p1995_p4 = pmov %p1993_p0 }
  0x9e   : > { %1468 = dma.done.wait (%p1994_p7), [#allocation7], 32  }
  0x9f   : > { %1470 = vsyncadd (%p1995_p4), [#allocation7], 4294967264  ;;  %p1996_p3 = pmov %p1993_p0 }
  0xa0   : > { %p1997_p8 = pmov %p1993_p0 }
  0xa1   : > { %1472 = dma.done.wait (%p1996_p3), [#allocation10], 256  }
  0xa2   : > { %1474 = vsyncadd (%p1997_p8), [#allocation10], 4294967040  ;;  %s315_s9 = sand.u32 1, %s1597_s27   ;;  %s1804_s13 = sand.u32 1, %s1493_s22  }
  0xa3   : > { %s1056_s12 = sshll.u32 %s1804_s13, 7  ;;  %s316_s17 = scalar_lea.sflag [#allocation4], %s315_s9 }
  0xa4   : > { %s1807_s16 = scalar_lea.vmem [#allocation11], %s1056_s12  ;;  %p1998_p5 = scmp.ne.s32.totalorder %s1981_s30, 0 }
  0xa6   : > { %1476 = dma.done.wait (%p1998_p5), %s316_s17, 2048  }
  0xa7   : > { %1478 = vsyncadd (%p1998_p5), %s316_s17, 4294965248  ;;  %s1057_s21 = sshll.u32 %s1804_s13, 8  ;;  %p1058_p9 = scmp.ne.s32.totalorder %s1501_s24, 0 }
  0xa8   : > { %s1814_s11 = scalar_lea.vmem [#allocation13], %s1057_s21  ;;  %v358_v0 = vld [vmem:[#allocation3] sm:$0xff] (!%p1058_p9)  ;;  %vm364_vm0 = vcmask (!%p1058_p9), 261120   ;;  %v360_v1 = vld [vmem:[#allocation3 + $0x10] sm:$0xff] (!%p1058_p9)  ;;  %v359_v2 = vld [vmem:[#allocation3 + $0x8] sm:$0xff] (!%p1058_p9) }
  0xa9   : > { %357 = sbr.rel (%p1058_p9) target bundleno = 716 (0x2cc), region = 64  ;;  %v365_v3 = vsel (!%p1058_p9), %vm364_vm0, %v358_v0, 0.0  ;;  %v371_v4 = vsel (!%p1058_p9), %vm364_vm0, %v360_v1, 0.0  ;;  %v361_v5 = vld [vmem:[#allocation3 + $0x18] sm:$0xff] (!%p1058_p9)  ;;  %v368_v6 = vsel (!%p1058_p9), %vm364_vm0, %v359_v2, 0.0  ;;  %v1233_v28 = vld [vmem:[#allocation9] sm:$0xff] (!%p1058_p9)  }
  0xaa   : > { %366 = vadd.xlane.f32.xlu0 (!%p1058_p9), %v365_v3  ;;  %372 = vadd.xlane.f32.xlu1 (!%p1058_p9), %v371_v4  ;;  %v374_v7 = vsel (!%p1058_p9), %vm364_vm0, %v361_v5, 0.0  ;;  %v1234_v29 = vld [vmem:[#allocation9 + $0x8] sm:$0xff] (!%p1058_p9)   ;;  %v1059_v44 = vld [vmem:[#allocation6] ss:$0 sm:$0xff] (!%p1058_p9)  ;;  %v1060_v49 = vld [vmem:[#allocation8] ss:$0 sm:$0xff] (!%p1058_p9) }
  0xab   : > { %1102 = vmatprep.subr.bf16.mxu0 (!%p1058_p9), %v1233_v28 }
  0xac   : > { %1103 = vmatpush3.bf16.msra.mxu0 (!%p1058_p9), %v1233_v28 }
  0xad   : > { %1104 = vmatprep.subr.bf16.mxu0 (!%p1058_p9), %v1234_v29 }
  0xae   : > { %369 = vadd.xlane.f32.xlu0 (!%p1058_p9), %v368_v6  ;;  %375 = vadd.xlane.f32.xlu1 (!%p1058_p9), %v374_v7 }
  0xb0   : > { %1105 = vmatpush3.bf16.msra.mxu0 %v1234_v29 }
 0x137   : > { %v367_v8 = vpop.xlane.xlu0 %366  ;;  %v373_v9 = vpop.xlane.xlu1 %372 }
 0x138   : > { %v378_v10 = vmul.f32 0.03125, %v367_v8  ;;  %v380_v11 = vmul.f32 0.03125, %v373_v9 }
 0x13a   : > { %v382_v12 = vsub.f32 %v358_v0, %v378_v10  ;;  %v384_v13 = vsub.f32 %v360_v1, %v380_v11 }
 0x13b   : > { %v370_v14 = vpop.xlane.xlu0 %369  ;;  %v376_v15 = vpop.xlane.xlu1 %375 }
 0x13c   : > { %v379_v16 = vmul.f32 0.03125, %v370_v14  ;;  %v381_v17 = vmul.f32 0.03125, %v376_v15  ;;  %v386_v18 = vmul.f32 %v382_v12, %v382_v12  ;;  %v388_v19 = vmul.f32 %v384_v13, %v384_v13 }
 0x13e   : > { %v383_v20 = vsub.f32 %v359_v2, %v379_v16  ;;  %v385_v21 = vsub.f32 %v361_v5, %v381_v17  ;;  %v390_v22 = vsel %vm364_vm0, %v386_v18, 0.0  ;;  %v396_v23 = vsel %vm364_vm0, %v388_v19, 0.0 }
 0x13f   : > { %391 = vadd.xlane.f32.xlu0 %v390_v22 }
 0x140   : > { %v387_v24 = vmul.f32 %v383_v20, %v383_v20  ;;  %v389_v25 = vmul.f32 %v385_v21, %v385_v21 }
 0x142   : > { %v393_v26 = vsel %vm364_vm0, %v387_v24, 0.0  ;;  %v399_v27 = vsel %vm364_vm0, %v389_v25, 0.0 }
 0x143   : > { %397 = vadd.xlane.f32.xlu0 %v396_v23  ;;  %394 = vadd.xlane.f32.xlu1 %v393_v26 }
 0x147   : > { %400 = vadd.xlane.f32.xlu1 %v399_v27 }
 0x1cc   : > { %v392_v30 = vpop.xlane.xlu0 %391 }
 0x1cd   : > { %v402_v31 = vmul.f32 0.03125, %v392_v30 }
 0x1cf   : > { %v406_v32 = vadd.f32 1e-05, %v402_v31 }
 0x1d0   : > { %v395_v33 = vpop.xlane.xlu1 %394  ;;  %v398_v34 = vpop.xlane.xlu0 %397 }
 0x1d1   : > { %1235 = vrsqrt.f32 %v406_v32  ;;  %v403_v35 = vmul.f32 0.03125, %v395_v33  ;;  %v404_v36 = vmul.f32 0.03125, %v398_v34 }
 0x1d3   : > { %v407_v37 = vadd.f32 1e-05, %v403_v35  ;;  %v408_v38 = vadd.f32 1e-05, %v404_v36 }
 0x1d4   : > { %v401_v39 = vpop.xlane.xlu1 %400 }
 0x1d5   : > { %1237 = vrsqrt.f32 %v407_v37  ;;  %v405_v40 = vmul.f32 0.03125, %v401_v39 }
 0x1d6   : > { %1239 = vrsqrt.f32 %v408_v38 }
 0x1d7   : > { %v409_v41 = vadd.f32 1e-05, %v405_v40 }
 0x1d9   : > { %1241 = vrsqrt.f32 %v409_v41 }
 0x1db   : > { %v1236_v42 = vpop.eup %1235 }
 0x1dc   : > { %v414_v43 = vmul.f32 %v1236_v42, %v382_v12 }
 0x1de   : > { %v424_v47 = vmul.f32 %v1059_v44, %v414_v43 }
 0x1df   : > { %v1238_v45 = vpop.eup %1237 }
 0x1e0   : > { %v1240_v46 = vpop.eup %1239  ;;  %v415_v48 = vmul.f32 %v1238_v45, %v383_v20  ;;  %v434_v53 = vadd.f32 %v1060_v49, %v424_v47 }
 0x1e1   : > { %v416_v50 = vmul.f32 %v1240_v46, %v384_v13 }
 0x1e2   : > { %v425_v51 = vmul.f32 %v1059_v44, %v415_v48 }
 0x1e3   : > { %v1242_v52 = vpop.eup %1241  ;;  %v426_v55 = vmul.f32 %v1059_v44, %v416_v50 }
 0x1e4   : > { %v435_v54 = vadd.f32 %v1060_v49, %v425_v51  ;;  %v417_v56 = vmul.f32 %v1242_v52, %v385_v21 }
 0x1e5   : > { %v436_v59 = vadd.f32 %v1060_v49, %v426_v55 }
 0x1e6   : > { %v438_v57 = vpack.c.bf16 %v435_v54, %v434_v53  ;;  %v427_v58 = vmul.f32 %v1059_v44, %v417_v56 }
 0x1e8   : > { %440 = vst.msk [vmem:[#allocation2] sm:$0xff] %vm364_vm0, %v438_v57  ;;  %v437_v60 = vadd.f32 %v1060_v49, %v427_v58 }
 0x1ea   : > { %v439_v61 = vpack.c.bf16 %v437_v60, %v436_v59 }
 0x1ec   : > { %441 = vst.msk [vmem:[#allocation2 + $0x8] sm:$0xff] %vm364_vm0, %v439_v61 }
 0x1ef   : > { %v442_v62 = vld [vmem:[#allocation2] sm:$0xff] }
 0x1f0   : > { %1106 = vmatprep.mubr.msk.bf16.mxu0 %vm364_vm0, %v442_v62 }
 0x1f3   : > { %v443_v63 = vld [vmem:[#allocation2 + $0x8] sm:$0xff] }
 0x1f4   : > { %1107 = vmatmul.mubr.msk.bf16.vlgmr.msra.gmra.mrb[0].mxu0 %vm364_vm0, %v443_v63 }
 0x2c7   : > { %v1108_v0 = vpop.f32.mrb[0].mxu0 }
 0x2c8   : > { %517 = vst [vmem:[#allocation12 + $0x10] sm:$0xff] %v1108_v0  ;;  %v500_v1 = vpop.f32.mrb[1].mxu0 }
 0x2c9   : > { %515 = vst [vmem:[#allocation12] sm:$0xff] %v500_v1  ;;  %v1109_v2 = vpop.f32.mrb[2].mxu0 }
 0x2ca   : > { %518 = vst [vmem:[#allocation12 + $0x18] sm:$0xff] %v1109_v2  ;;  %v503_v3 = vpop.f32.mrb[3].mxu0 }
 0x2cb   : > { %516 = vst [vmem:[#allocation12 + $0x8] sm:$0xff] %v503_v3 }
 0x2cc PF: > { %v521_v4 = vld [vmem:[%s1807_s16] sm:$0xff]  ;;  %v522_v6 = vld [vmem:[%s1807_s16 + $0x8] sm:$0xff]  ;;  %v1523_v12 = vmov 0   ;;  %v523_v19 = vld [vmem:[%s1807_s16 + $0x10] sm:$0xff]  ;;  %vm617_vm1 = vcmask 261120   ;;  %s1524_s30 = smov [#allocation12]  }
 0x2cd   : > { %v525_v5 = vld [vmem:[%s1807_s16 + $0x20] sm:$0xff]  ;;  %v526_v8 = vld [vmem:[%s1807_s16 + $0x28] sm:$0xff]  ;;  %656 = vmatprep.mubr.bf16.mxu0 %v1523_v12  ;;  %709 = vmatprep.mubr.bf16.mxu1 %v1523_v12  ;;  %v527_v20 = vld [vmem:[%s1807_s16 + $0x30] sm:$0xff]  ;;  %s882_s7 = sshll.u32 %s1524_s30, 4  ;;  %p1999_p6 = scmp.eq.s32.totalorder %s1597_s27, 15  ;;  %s883_s7 = int_to_ptr.vmem [resolvable:$true] %s882_s7 }
 0x2ce   : > { %v1066_v7 = vcombine.high %v521_v4, %v525_v5  ;;  %v1065_v9 = vcombine.low %v521_v4, %v525_v5  ;;  %v529_v10 = vld [vmem:[%s1807_s16 + $0x40] sm:$0xff]  ;;  %v1068_v13 = vcombine.high %v522_v6, %v526_v8  ;;  %v1067_v14 = vcombine.low %v522_v6, %v526_v8  ;;  %v530_v16 = vld [vmem:[%s1807_s16 + $0x48] sm:$0xff]  ;;  %v524_v21 = vld [vmem:[%s1807_s16 + $0x18] sm:$0xff]  ;;  %s1385_s28 = scalar_lea.vmem %s883_s7, 512  ;;  %p1392_p13 = scmp.lt.s32.totalorder %s883_s7, %s883_s7 }
 0x2cf   : > { %v533_v11 = vld [vmem:[%s1807_s16 + $0x60] sm:$0xff]  ;;  %v534_v17 = vld [vmem:[%s1807_s16 + $0x68] sm:$0xff]  ;;  %v528_v23 = vld [vmem:[%s1807_s16 + $0x38] sm:$0xff]  ;;  %v1070_v25 = vcombine.high %v523_v19, %v527_v20  ;;  %v1069_v30 = vcombine.low %v523_v19, %v527_v20  ;;  %p1386_p1 = scmp.ne.s32.totalorder %s883_s7, %s1385_s28  ;;  %p1393_p12 = scmp.lt.s32.totalorder %s1385_s28, %s1385_s28 }
 0x2d0   : > { %v1074_v15 = vcombine.high %v529_v10, %v533_v11  ;;  %624 = vmatprep.subr.bf16.mxu0 %v1066_v7  ;;  %v1076_v18 = vcombine.high %v530_v16, %v534_v17  ;;  %677 = vmatprep.subr.bf16.mxu1 %v1068_v13  ;;  %v1073_v22 = vcombine.low %v529_v10, %v533_v11  ;;  %v531_v27 = vld [vmem:[%s1807_s16 + $0x50] sm:$0xff]  ;;  %v519_v29 = vld [vmem:[#allocation2] sm:$0xff]  ;;  %v520_v38 = vld [vmem:[#allocation2 + $0x8] sm:$0xff] }
 0x2d1   : > { %625 = vmatpush1.bf16.msra.mxu0 %v1065_v9  ;;  %678 = vmatpush1.bf16.msra.mxu1 %v1067_v14  ;;  %v1075_v24 = vcombine.low %v530_v16, %v534_v17  ;;  %v1072_v26 = vcombine.high %v524_v21, %v528_v23  ;;  %v535_v28 = vld [vmem:[%s1807_s16 + $0x70] sm:$0xff]  ;;  %v532_v31 = vld [vmem:[%s1807_s16 + $0x58] sm:$0xff]  ;;  %v1071_v33 = vcombine.low %v524_v21, %v528_v23  ;;  %p1387_p2 = pnand %p1386_p1, %p1999_p6  ;;  %p1394_p10 = por %p1393_p12, %p1392_p13 }
 0x2d2   : > { %626 = vmatprep.subr.bf16.mxu0 %v1074_v15  ;;  %679 = vmatprep.subr.bf16.mxu1 %v1076_v18  ;;  %v536_v32 = vld [vmem:[%s1807_s16 + $0x78] sm:$0xff]  ;;  %v1078_v34 = vcombine.high %v531_v27, %v535_v28  ;;  %v1077_v36 = vcombine.low %v531_v27, %v535_v28 }
 0x2d3   : > { %v1080_v35 = vcombine.high %v532_v31, %v536_v32  ;;  %v1079_v37 = vcombine.low %v532_v31, %v536_v32  ;;  %p1388_p11 = pneg %p1387_p2 }
 0x2d5   : > { %627 = vmatpush1.bf16.msra.mxu0 %v1073_v22  ;;  %680 = vmatpush1.bf16.msra.mxu1 %v1075_v24  ;;  %p1395_p0 = pnand %p1394_p10, %p1388_p11 }
 0x2d6   : > { %730 = vmatprep.subr.bf16.mxu0 %v1070_v25  ;;  %783 = vmatprep.subr.bf16.mxu1 %v1072_v26 }
 0x2d8   : > { %1081 = vmatmul.mubr.msk.bf16.vlgmr.msra.gmra.mrb[0].mxu0 %vm617_vm1, %v519_v29  ;;  %1083 = vmatmul.mubr.msk.bf16.vlgmr.msra.gmra.mrb[0].mxu1 %vm617_vm1, %v519_v29 }
 0x2d9   : > { %731 = vmatpush1.bf16.msra.mxu0 %v1069_v30  ;;  %784 = vmatpush1.bf16.msra.mxu1 %v1071_v33 }
 0x2da   : > { %666 = vmatprep.mubr.bf16.mxu0 %v1523_v12  ;;  %719 = vmatprep.mubr.bf16.mxu1 %v1523_v12 }
 0x2db   : > { %732 = vmatprep.subr.bf16.mxu0 %v1078_v34  ;;  %785 = vmatprep.subr.bf16.mxu1 %v1080_v35 }
 0x2dd   : > { %733 = vmatpush1.bf16.msra.mxu0 %v1077_v36  ;;  %786 = vmatpush1.bf16.msra.mxu1 %v1079_v37 }
 0x2e0   : > { %1082 = vmatmul.mubr.msk.bf16.gmra.mrb[4].mxu0 %vm617_vm1, %v520_v38  ;;  %1084 = vmatmul.mubr.msk.bf16.gmra.mrb[4].mxu1 %vm617_vm1, %v520_v38 }
 0x2e1   : > { %762 = vmatprep.mubr.bf16.mxu0 %v1523_v12  ;;  %815 = vmatprep.mubr.bf16.mxu1 %v1523_v12 }
 0x2e8   : > { %1085 = vmatmul.mubr.msk.bf16.vlgmr.msra.gmra.mrb[8].mxu0 %vm617_vm1, %v519_v29  ;;  %1087 = vmatmul.mubr.msk.bf16.vlgmr.msra.gmra.mrb[8].mxu1 %vm617_vm1, %v519_v29 }
 0x2e9   : > { %772 = vmatprep.mubr.bf16.mxu0 %v1523_v12  ;;  %825 = vmatprep.mubr.bf16.mxu1 %v1523_v12 }
 0x2f0   : > { %1086 = vmatmul.mubr.msk.bf16.gmra.mrb[12].mxu0 %vm617_vm1, %v520_v38  ;;  %1088 = vmatmul.mubr.msk.bf16.gmra.mrb[12].mxu1 %vm617_vm1, %v520_v38 }
 0x2f1   : > { %1398 = shalt.err (!%p1395_p0)
}
 0x2f2   : > { %s1399_s15 = scalar_lea.hbm %s1967_s5, 512  ;;  %p2000_p4 = pmov %p1999_p6 }
 0x2f3   : > { %p1400_p7 = scmp.ne.s32.totalorder %s1967_s5, %s1399_s15  ;;  %p1405_p5 = scmp.lt.u32.totalorder %s1399_s15, %s1967_s5 }
 0x2f5   : > { %p1401_p3 = pnand %p1400_p7, %p2000_p4 }
 0x2f7   : > { %p1402_p8 = pneg %p1401_p3 }
 0x2f9   : > { %p1407_p9 = pnand %p1405_p5, %p1402_p8 }
 0x2fb   : > { %1410 = shalt.err (!%p1407_p9)
}
 0x2fc   : > { %s1525_s12 = smov 128   ;;  %s1526_s17 = smov 8  }
 0x2fd   : > { %p2001_p1 = pmov %p2000_p4  ;;  %s1097_s30 = sshll.u32 %s1501_s24, 10 }
 0x2fe   : > { %s1901_s19 = scalar_lea.hbm %s1968_s6, %s1097_s30  ;;  %s2002_s15 = sld [smem:[#allocation22_spill]] }
 0x2ff   : > { %1129 = dma.vmem_to_hbm [thread:$0]  (%p2001_p1), %s883_s7, 512, %s1967_s5, [#allocation5], %s1525_s12, %s1525_s12, %s1526_s17  }
 0x300   : > { %s901_s7 = sshll.u32 %s1814_s11, 4  ;;  %s869_s24 = scalar_lea.sflag [#allocation14], %s1804_s13  ;;  %s1905_s7 = int_to_ptr.vmem [resolvable:$true] %s901_s7 }
 0x301   : > { %s1411_s18 = scalar_lea.vmem %s1905_s7, 4096  ;;  %s1527_s10 = smov [#allocation13]  }
 0x302   : > { %p1412_p6 = scmp.ne.s32.totalorder %s1905_s7, %s1411_s18  ;;  %s1415_s14 = sshll.u32 %s1527_s10, 4  ;;  %s1416_s14 = int_to_ptr.vmem [resolvable:$false] %s1415_s14 }
 0x303   : > { %s1417_s9 = scalar_lea.vmem %s1416_s14, 8192  ;;  %p1418_p12 = scmp.lt.s32.totalorder %s1905_s7, %s1416_s14 }
 0x304   : > { %p2003_p2 = scmp.ne.s32.totalorder %s2002_s15, 0  ;;  %p1419_p10 = scmp.lt.s32.totalorder %s1417_s9, %s1411_s18 }
 0x306   : > { %p1413_p11 = pnand %p1412_p6, %p2003_p2  ;;  %p1420_p0 = por %p1419_p10, %p1418_p12 }
 0x308   : > { %p1414_p13 = pneg %p1413_p11 }
 0x30a   : > { %p1421_p7 = pnand %p1420_p0, %p1414_p13 }
 0x3ab   : > { %v658_v39 = vpop.f32.mrb[0].mxu0  ;;  %v711_v40 = vpop.f32.mrb[0].mxu1 }
 0x3ac   : > { %836 = vst [vmem:[%s1814_s11] sm:$0xff] %v658_v39  ;;  %v660_v41 = vpop.f32.mrb[1].mxu0  ;;  %838 = vst [vmem:[%s1814_s11 + $0x10] sm:$0xff] %v711_v40  ;;  %v713_v42 = vpop.f32.mrb[1].mxu1 }
 0x3ad   : > { %837 = vst [vmem:[%s1814_s11 + $0x8] sm:$0xff] %v660_v41  ;;  %v662_v43 = vpop.f32.mrb[2].mxu0  ;;  %839 = vst [vmem:[%s1814_s11 + $0x18] sm:$0xff] %v713_v42  ;;  %v715_v44 = vpop.f32.mrb[2].mxu1 }
 0x3ae   : > { %844 = vst [vmem:[%s1814_s11 + $0x40] sm:$0xff] %v662_v43  ;;  %v664_v45 = vpop.f32.mrb[3].mxu0  ;;  %846 = vst [vmem:[%s1814_s11 + $0x50] sm:$0xff] %v715_v44  ;;  %v717_v46 = vpop.f32.mrb[3].mxu1 }
 0x3af   : > { %845 = vst [vmem:[%s1814_s11 + $0x48] sm:$0xff] %v664_v45  ;;  %847 = vst [vmem:[%s1814_s11 + $0x58] sm:$0xff] %v717_v46 }
 0x3b3   : > { %v668_v47 = vpop.f32.mrb[4].mxu0  ;;  %v721_v48 = vpop.f32.mrb[4].mxu1 }
 0x3b4   : > { %852 = vst [vmem:[%s1814_s11 + $0x80] sm:$0xff] %v668_v47  ;;  %v670_v49 = vpop.f32.mrb[5].mxu0  ;;  %854 = vst [vmem:[%s1814_s11 + $0x90] sm:$0xff] %v721_v48  ;;  %v723_v50 = vpop.f32.mrb[5].mxu1 }
 0x3b5   : > { %853 = vst [vmem:[%s1814_s11 + $0x88] sm:$0xff] %v670_v49  ;;  %v672_v51 = vpop.f32.mrb[6].mxu0  ;;  %855 = vst [vmem:[%s1814_s11 + $0x98] sm:$0xff] %v723_v50  ;;  %v725_v52 = vpop.f32.mrb[6].mxu1 }
 0x3b6   : > { %860 = vst [vmem:[%s1814_s11 + $0xc0] sm:$0xff] %v672_v51  ;;  %v674_v53 = vpop.f32.mrb[7].mxu0  ;;  %862 = vst [vmem:[%s1814_s11 + $0xd0] sm:$0xff] %v725_v52  ;;  %v727_v54 = vpop.f32.mrb[7].mxu1 }
 0x3b7   : > { %861 = vst [vmem:[%s1814_s11 + $0xc8] sm:$0xff] %v674_v53  ;;  %863 = vst [vmem:[%s1814_s11 + $0xd8] sm:$0xff] %v727_v54 }
 0x3bb   : > { %v764_v55 = vpop.f32.mrb[8].mxu0  ;;  %v817_v56 = vpop.f32.mrb[8].mxu1 }
 0x3bc   : > { %840 = vst [vmem:[%s1814_s11 + $0x20] sm:$0xff] %v764_v55  ;;  %v766_v57 = vpop.f32.mrb[9].mxu0  ;;  %842 = vst [vmem:[%s1814_s11 + $0x30] sm:$0xff] %v817_v56  ;;  %v819_v58 = vpop.f32.mrb[9].mxu1 }
 0x3bd   : > { %841 = vst [vmem:[%s1814_s11 + $0x28] sm:$0xff] %v766_v57  ;;  %v768_v59 = vpop.f32.mrb[10].mxu0  ;;  %843 = vst [vmem:[%s1814_s11 + $0x38] sm:$0xff] %v819_v58  ;;  %v821_v60 = vpop.f32.mrb[10].mxu1 }
 0x3be   : > { %848 = vst [vmem:[%s1814_s11 + $0x60] sm:$0xff] %v768_v59  ;;  %v770_v61 = vpop.f32.mrb[11].mxu0  ;;  %850 = vst [vmem:[%s1814_s11 + $0x70] sm:$0xff] %v821_v60  ;;  %v823_v62 = vpop.f32.mrb[11].mxu1 }
 0x3bf   : > { %849 = vst [vmem:[%s1814_s11 + $0x68] sm:$0xff] %v770_v61  ;;  %851 = vst [vmem:[%s1814_s11 + $0x78] sm:$0xff] %v823_v62 }
 0x3c3   : > { %v774_v63 = vpop.f32.mrb[12].mxu0  ;;  %v827_v0 = vpop.f32.mrb[12].mxu1 }
 0x3c4   : > { %856 = vst [vmem:[%s1814_s11 + $0xa0] sm:$0xff] %v774_v63  ;;  %v776_v1 = vpop.f32.mrb[13].mxu0  ;;  %858 = vst [vmem:[%s1814_s11 + $0xb0] sm:$0xff] %v827_v0  ;;  %v829_v2 = vpop.f32.mrb[13].mxu1 }
 0x3c5   : > { %857 = vst [vmem:[%s1814_s11 + $0xa8] sm:$0xff] %v776_v1  ;;  %v778_v3 = vpop.f32.mrb[14].mxu0  ;;  %859 = vst [vmem:[%s1814_s11 + $0xb8] sm:$0xff] %v829_v2  ;;  %v831_v4 = vpop.f32.mrb[14].mxu1 }
 0x3c6   : > { %864 = vst [vmem:[%s1814_s11 + $0xe0] sm:$0xff] %v778_v3  ;;  %v780_v5 = vpop.f32.mrb[15].mxu0  ;;  %866 = vst [vmem:[%s1814_s11 + $0xf0] sm:$0xff] %v831_v4  ;;  %v833_v6 = vpop.f32.mrb[15].mxu1 }
 0x3c7   : > { %865 = vst [vmem:[%s1814_s11 + $0xe8] sm:$0xff] %v780_v5  ;;  %867 = vst [vmem:[%s1814_s11 + $0xf8] sm:$0xff] %v833_v6 }
 0x3c8   : > { %1424 = shalt.err (!%p1421_p7)
}
 0x3c9   : > { %s1425_s11 = scalar_lea.hbm %s1901_s19, 4096  ;;  %s1429_s16 = scalar_lea.hbm %s1968_s6, 65536 }
 0x3ca   : > { %p1426_p4 = scmp.ne.s32.totalorder %s1901_s19, %s1425_s11  ;;  %p1430_p5 = scmp.lt.u32.totalorder %s1901_s19, %s1968_s6 }
 0x3cb   : > { %p1431_p9 = scmp.lt.u32.totalorder %s1429_s16, %s1425_s11  ;;  %p1433_p6 = scmp.lt.u32.totalorder %s1425_s11, %s1901_s19 }
 0x3cc   : > { %p1427_p3 = pnand %p1426_p4, %p2003_p2 }
 0x3cd   : > { %p1432_p1 = por %p1431_p9, %p1430_p5 }
 0x3ce   : > { %p1428_p8 = pneg %p1427_p3 }
 0x3cf   : > { %p1434_p11 = por %p1433_p6, %p1432_p1 }
 0x3d1   : > { %p1435_p13 = pnand %p1434_p11, %p1428_p8 }
 0x3d3   : > { %1438 = shalt.err (!%p1435_p13)
}
 0x3d4   : > { %s1528_s28 = smov 1024   ;;  %s1529_s29 = smov 16384  }
 0x3d5   : > { %s1530_s18 = smov 64   ;;  %p2004_p12 = scmp.eq.s32.totalorder %s1597_s27, 15 }
 0x3d6   : > { %1130 = dma.vmem_to_hbm [thread:$0]  (%p2003_p2), %s1905_s7, 4096, %s1901_s19, %s869_s24, %s1528_s28, %s1529_s29, %s1530_s18  }
 0x3d7   : > { %1480 = dma.done.wait (%p2004_p12), [#allocation5], 512   ;;  %p2005_p10 = pmov %p2004_p12 }
 0x3d9   : > { %1482 = vsyncadd (%p2005_p10), [#allocation5], 4294966784 }
 0x3da PF: > { %s2006_s10 = sld [smem:[#allocation21_spill]]  ;;  %s2007_s14 = sld [smem:[#allocation23_spill]] }
 0x3db   : > { %p1166_p0 = scmp.ge.s32.totalorder %s1509_s26, 2 }
 0x3e0   : > { %s920_s9 = sand.u32 1, %s2006_s10   ;;  %p2008_p7 = scmp.ne.s32.totalorder %s2007_s14, 0 }
 0x3e1   : > { %s921_s11 = scalar_lea.sflag [#allocation14], %s920_s9 }
 0x3e2   : > { %p1152_p4 = pnand %p1166_p0, %p2008_p7 }
 0x3e4   : > { %1484 = dma.done.wait (!%p1152_p4), %s921_s11, 4096  }
 0x3e5   : > { %1486 = vsyncadd (!%p1152_p4), %s921_s11, 4294963200  ;;  %s24_s26 = sadd.s32 1, %s1509_s26   ;;  %s2009_s21 = smov %s1493_s22 }
 0x3e6   : > { %p21_p3 = scmp.ge.s32.totalorder %s24_s26, 18   ;;  %s2010_s22 = smov %s1497_s23 }
 0x3e7   : > { %s2011_s23 = smov %s1758_s8  ;;  %s2012_s24 = smov %s1505_s25 }
 0x3e8   : > { %s2013_s25 = smov %s2015_s20  ;;  %23 = sbr.rel (!%p21_p3) target bundleno = 8 (0x8), region = 115 }
 0x3ef   :  { %926 = vsyncpa [#allocation4], 1 }
 0x3f0   :  { %928 = vsyncpa [#allocation4 + $0x1], 1 }
 0x3f1   :  { %929 = vsyncpa [#allocation7], 1 }
 0x3f2   :  { %930 = vsyncpa [#allocation10], 1 }
 0x3f3   :  { %931 = vsyncpa [#allocation5], 1 }
 0x3f4   :  { %933 = vsyncpa [#allocation5 + $0x1], 1 }
 0x3f5   :  { %934 = vsyncpa [#allocation14], 1 }
 0x3f6   :  { %936 = vsyncpa [#allocation14 + $0x1], 1 }

</bundles_post_ra>
